<compile_context>
chip_gen: v6e
topology: v6e:2x2x1
jax: 0.10.0
libtpu: 0.0.40
codegen_flags: <defaults>
</compile_context>

<pallas_src>
import functools

import jax
import jax.numpy as jnp
from jax.experimental import pallas as pl
from jax.experimental.pallas import tpu as pltpu

FC1_DIMS = 256
FC2_DIMS = 256
LANE = 128


def _round_up(x, m):
    return (x + m - 1) // m * m


def actor_forward_kernel(n_actions, x_ref, w1_ref, b1_ref, w2_ref, b2_ref,
                         wh_ref, bh_ref, out_ref):
    """One batch tile: x (TB, K_pad) -> fused [mu | sigma | 0-pad] (TB, N_pad)."""
    x = x_ref[...]

    # fc1 + ReLU  (MXU f32 accumulation; bias/ReLU on VPU in f32)
    h1 = jnp.dot(x, w1_ref[...], preferred_element_type=jnp.float32) + b1_ref[...]
    h1 = jnp.maximum(h1, 0.0)

    # fc2 + ReLU  (downcast only the dot operand)
    h2 = jnp.dot(h1.astype(w2_ref.dtype), w2_ref[...],
                 preferred_element_type=jnp.float32) + b2_ref[...]
    h2 = jnp.maximum(h2, 0.0)

    # Fused mu|sigma head: a single lane-dense matmul + store.
    head = jnp.dot(h2.astype(wh_ref.dtype), wh_ref[...],
                   preferred_element_type=jnp.float32) + bh_ref[...]

    # clamp(min=1e-6, max=2) only on the sigma columns [n_actions, 2*n_actions)
    col = jax.lax.broadcasted_iota(jnp.int32, head.shape, 1)
    is_sigma = (col >= n_actions) & (col < 2 * n_actions)
    head = jnp.where(is_sigma, jnp.clip(head, 1e-6, 2.0), head)

    out_ref[...] = head.astype(out_ref.dtype)


def pack_params(params, use_bf16=True):
    """Pad/fuse the PyTorch-style params into MXU-friendly layouts.

    - w1 rows zero-padded so the fc1 contraction is a multiple of 128.
    - mu/sigma heads concatenated (and zero-padded to 128 output lanes).
    - matmul weights cast to bf16 (f32 accumulation in-kernel); biases stay f32.
    """
    input_dims = params["w1"].shape[0]
    n_actions = params["wmu"].shape[1]
    k_pad = _round_up(max(input_dims, LANE), LANE)
    n_pad = _round_up(max(2 * n_actions, LANE), LANE)
    mm_dtype = jnp.bfloat16 if use_bf16 else jnp.float32

    w1 = jnp.zeros((k_pad, FC1_DIMS), jnp.float32)
    w1 = w1.at[:input_dims, :].set(params["w1"])

    wh = jnp.zeros((FC2_DIMS, n_pad), jnp.float32)
    wh = wh.at[:, :n_actions].set(params["wmu"])
    wh = wh.at[:, n_actions:2 * n_actions].set(params["wsig"])

    bh = jnp.zeros((1, n_pad), jnp.float32)
    bh = bh.at[:, :n_actions].set(params["bmu"])
    bh = bh.at[:, n_actions:2 * n_actions].set(params["bsig"])

    return {
        "w1": w1.astype(mm_dtype),
        "b1": params["b1"].astype(jnp.float32),
        "w2": params["w2"].astype(mm_dtype),
        "b2": params["b2"].astype(jnp.float32),
        "wh": wh.astype(mm_dtype),
        "bh": bh,
    }


def actor_forward(state, packed, n_actions, *, block_batch=512):
    """state: (batch, input_dims) f32 -> (mu, sigma), each (batch, n_actions) f32."""
    batch, input_dims = state.shape
    k_pad = packed["w1"].shape[0]
    n_pad = packed["wh"].shape[1]
    mm_dtype = packed["w1"].dtype

    # Batch tile: multiple of 8 sublanes, capped at block_batch; pad batch to a
    # whole number of tiles (tail rows are zero and sliced away afterwards).
    tb = min(block_batch, _round_up(batch, 8))
    b_pad = _round_up(batch, tb)

    x = state.astype(mm_dtype)
    x = jnp.pad(x, ((0, b_pad - batch), (0, k_pad - input_dims)))

    resident = lambda i: (0, 0)  # weights/biases: same block every step -> DMA'd once

    flops = 2 * b_pad * (k_pad * FC1_DIMS + FC1_DIMS * FC2_DIMS + FC2_DIMS * n_pad)
    bytes_accessed = (
        b_pad * k_pad * x.dtype.itemsize
        + sum(int(v.size) * v.dtype.itemsize for v in packed.values())
        + b_pad * n_pad * 4)

    out = pl.pallas_call(
        functools.partial(actor_forward_kernel, n_actions),
        out_shape=jax.ShapeDtypeStruct((b_pad, n_pad), jnp.float32),
        grid=(b_pad // tb,),
        in_specs=[
            pl.BlockSpec((tb, k_pad), lambda i: (i, 0)),        # state tile
            pl.BlockSpec((k_pad, FC1_DIMS), resident),          # w1
            pl.BlockSpec((1, FC1_DIMS), resident),              # b1
            pl.BlockSpec((FC1_DIMS, FC2_DIMS), resident),       # w2
            pl.BlockSpec((1, FC2_DIMS), resident),              # b2
            pl.BlockSpec((FC2_DIMS, n_pad), resident),          # fused head weights
            pl.BlockSpec((1, n_pad), resident),                 # fused head bias
        ],
        out_specs=pl.BlockSpec((tb, n_pad), lambda i: (i, 0)),
        compiler_params=pltpu.CompilerParams(
            dimension_semantics=("parallel",)),
        cost_estimate=pl.CostEstimate(
            flops=flops, bytes_accessed=bytes_accessed, transcendentals=0),
    )(x, packed["w1"], packed["b1"], packed["w2"], packed["b2"],
      packed["wh"], packed["bh"])

    mu = out[:batch, :n_actions]
    sigma = out[:batch, n_actions:2 * n_actions]
    return mu, sigma


def init_params(key, input_dims, fc1_dims=256, fc2_dims=256, n_actions=2,
                init_w=0.003):
    """Deterministic init mirroring the PyTorch module's __init__.

    fc1/fc2 use PyTorch's default Linear init U(-1/sqrt(fan_in), 1/sqrt(fan_in));
    mu uses U(0, init_w); sigma uses U(-init_w, init_w).
    Weights are stored as (in_features, out_features).
    """
    k = jax.random.split(key, 8)

    def uni(kk, shape, lo, hi):
        return jax.random.uniform(kk, shape, jnp.float32, lo, hi)

    b1_bound = 1.0 / (input_dims ** 0.5)
    b2_bound = 1.0 / (fc1_dims ** 0.5)
    return {
        "w1":   uni(k[0], (input_dims, fc1_dims), -b1_bound, b1_bound),
        "b1":   uni(k[1], (1, fc1_dims),          -b1_bound, b1_bound),
        "w2":   uni(k[2], (fc1_dims, fc2_dims),   -b2_bound, b2_bound),
        "b2":   uni(k[3], (1, fc2_dims),          -b2_bound, b2_bound),
        "wmu":  uni(k[4], (fc2_dims, n_actions),  0.0,  init_w),
        "bmu":  uni(k[5], (1, n_actions),         0.0,  init_w),
        "wsig": uni(k[6], (fc2_dims, n_actions), -init_w, init_w),
        "bsig": uni(k[7], (1, n_actions),        -init_w, init_w),
    }


if __name__ == "__main__":
    key = jax.random.PRNGKey(0)
    k_state, k_params = jax.random.split(key)

    batch = 8
    input_dims = 16
    n_actions = 2

    state = jax.random.normal(k_state, (batch, input_dims), jnp.float32)
    params = init_params(k_params, input_dims, n_actions=n_actions)
    packed = pack_params(params, use_bf16=True)

    mu, sigma = actor_forward(state, packed, n_actions)
    jax.block_until_ready((mu, sigma))

    # Tight check: plain-JAX reference using the same bf16 matmul operands.
    k_pad = packed["w1"].shape[0]
    xb = jnp.pad(state, ((0, 0), (0, k_pad - input_dims))).astype(packed["w1"].dtype)
    h1 = jnp.maximum(jnp.dot(xb, packed["w1"],
                             preferred_element_type=jnp.float32) + packed["b1"], 0.0)
    h2 = jnp.maximum(jnp.dot(h1.astype(packed["w2"].dtype), packed["w2"],
                             preferred_element_type=jnp.float32) + packed["b2"], 0.0)
    head = jnp.dot(h2.astype(packed["wh"].dtype), packed["wh"],
                   preferred_element_type=jnp.float32) + packed["bh"]
    mu_ref = head[:, :n_actions]
    sigma_ref = jnp.clip(head[:, n_actions:2 * n_actions], 1e-6, 2.0)
    assert jnp.allclose(mu, mu_ref, atol=1e-4, rtol=1e-4), "mu mismatch (bf16 ref)"
    assert jnp.allclose(sigma, sigma_ref, atol=1e-4, rtol=1e-4), "sigma mismatch (bf16 ref)"

    # Loose check: pure-f32 reference equivalent to the PyTorch forward.
    h1f = jnp.maximum(state @ params["w1"] + params["b1"], 0.0)
    h2f = jnp.maximum(h1f @ params["w2"] + params["b2"], 0.0)
    mu_f32 = h2f @ params["wmu"] + params["bmu"]
    sigma_f32 = jnp.clip(h2f @ params["wsig"] + params["bsig"], 1e-6, 2.0)
    assert jnp.allclose(mu, mu_f32, atol=2e-2, rtol=2e-2), "mu mismatch (f32 ref)"
    assert jnp.allclose(sigma, sigma_f32, atol=2e-2, rtol=2e-2), "sigma mismatch (f32 ref)"

    print("KERNEL_OK")
</pallas_src>

<mosaic_0001>
module attributes {stable_mosaic.version = 11 : i64} {
  func.func @actor_forward_kernel(%arg0: i32, %arg1: memref<8x128xbf16, #tpu.memory_space<vmem>>, %arg2: memref<128x256xbf16, #tpu.memory_space<vmem>>, %arg3: memref<1x256xf32, #tpu.memory_space<vmem>>, %arg4: memref<256x256xbf16, #tpu.memory_space<vmem>>, %arg5: memref<1x256xf32, #tpu.memory_space<vmem>>, %arg6: memref<256x128xbf16, #tpu.memory_space<vmem>>, %arg7: memref<1x128xf32, #tpu.memory_space<vmem>>, %arg8: memref<8x128xf32, #tpu.memory_space<vmem>>) attributes {dimension_semantics = [#tpu.dimension_semantics<parallel>], iteration_bounds = array<i64: 1>, scalar_prefetch = 0 : i64, scratch_operands = 0 : i64, tpu.core_type = #tpu.core_type<tc>, window_params = [{transform_indices = @transform_0, window_bounds = array<i64: 8, 128>}, {pipeline_mode = #tpu.pipeline_mode<synchronous>, transform_indices = @transform_1, window_bounds = array<i64: 128, 256>}, {pipeline_mode = #tpu.pipeline_mode<synchronous>, transform_indices = @transform_2, window_bounds = array<i64: 1, 256>}, {pipeline_mode = #tpu.pipeline_mode<synchronous>, transform_indices = @transform_3, window_bounds = array<i64: 256, 256>}, {pipeline_mode = #tpu.pipeline_mode<synchronous>, transform_indices = @transform_4, window_bounds = array<i64: 1, 256>}, {pipeline_mode = #tpu.pipeline_mode<synchronous>, transform_indices = @transform_5, window_bounds = array<i64: 256, 128>}, {pipeline_mode = #tpu.pipeline_mode<synchronous>, transform_indices = @transform_6, window_bounds = array<i64: 1, 128>}, {transform_indices = @transform_7, window_bounds = array<i64: 8, 128>}]} {
    %c0 = arith.constant 0 : index
    %c0_0 = arith.constant 0 : index
    %0 = vector.load %arg1[%c0, %c0_0] : memref<8x128xbf16, #tpu.memory_space<vmem>>, vector<8x128xbf16>
    %c0_1 = arith.constant 0 : index
    %c0_2 = arith.constant 0 : index
    %1 = vector.load %arg2[%c0_1, %c0_2] : memref<128x256xbf16, #tpu.memory_space<vmem>>, vector<128x256xbf16>
    %cst = arith.constant dense<0.000000e+00> : vector<8x256xf32>
    %2 = tpu.matmul %0, %1, %cst {dimension_numbers = #tpu.dot_dimension_numbers<[1], [0], [0], [1], [0, 0, 1, 1], [], []>} : vector<8x128xbf16>, vector<128x256xbf16>, vector<8x256xf32> -> vector<8x256xf32>
    %c0_3 = arith.constant 0 : index
    %c0_4 = arith.constant 0 : index
    %3 = vector.load %arg3[%c0_3, %c0_4] : memref<1x256xf32, #tpu.memory_space<vmem>>, vector<1x256xf32>
    %4 = vector.broadcast %3 : vector<1x256xf32> to vector<8x256xf32>
    %5 = arith.addf %2, %4 : vector<8x256xf32>
    %cst_5 = arith.constant 0.000000e+00 : f32
    %6 = vector.broadcast %cst_5 : f32 to vector<8x256xf32>
    %7 = arith.maximumf %5, %6 : vector<8x256xf32>
    %8 = arith.truncf %7 : vector<8x256xf32> to vector<8x256xbf16>
    %c0_6 = arith.constant 0 : index
    %c0_7 = arith.constant 0 : index
    %9 = vector.load %arg4[%c0_6, %c0_7] : memref<256x256xbf16, #tpu.memory_space<vmem>>, vector<256x256xbf16>
    %cst_8 = arith.constant dense<0.000000e+00> : vector<8x256xf32>
    %10 = tpu.matmul %8, %9, %cst_8 {dimension_numbers = #tpu.dot_dimension_numbers<[1], [0], [0], [1], [0, 0, 1, 1], [], []>} : vector<8x256xbf16>, vector<256x256xbf16>, vector<8x256xf32> -> vector<8x256xf32>
    %c0_9 = arith.constant 0 : index
    %c0_10 = arith.constant 0 : index
    %11 = vector.load %arg5[%c0_9, %c0_10] : memref<1x256xf32, #tpu.memory_space<vmem>>, vector<1x256xf32>
    %12 = vector.broadcast %11 : vector<1x256xf32> to vector<8x256xf32>
    %13 = arith.addf %10, %12 : vector<8x256xf32>
    %cst_11 = arith.constant 0.000000e+00 : f32
    %14 = vector.broadcast %cst_11 : f32 to vector<8x256xf32>
    %15 = arith.maximumf %13, %14 : vector<8x256xf32>
    %16 = arith.truncf %15 : vector<8x256xf32> to vector<8x256xbf16>
    %c0_12 = arith.constant 0 : index
    %c0_13 = arith.constant 0 : index
    %17 = vector.load %arg6[%c0_12, %c0_13] : memref<256x128xbf16, #tpu.memory_space<vmem>>, vector<256x128xbf16>
    %cst_14 = arith.constant dense<0.000000e+00> : vector<8x128xf32>
    %18 = tpu.matmul %16, %17, %cst_14 {dimension_numbers = #tpu.dot_dimension_numbers<[1], [0], [0], [1], [0, 0, 1, 1], [], []>} : vector<8x256xbf16>, vector<256x128xbf16>, vector<8x128xf32> -> vector<8x128xf32>
    %c0_15 = arith.constant 0 : index
    %c0_16 = arith.constant 0 : index
    %19 = vector.load %arg7[%c0_15, %c0_16] : memref<1x128xf32, #tpu.memory_space<vmem>>, vector<1x128xf32>
    %20 = vector.broadcast %19 : vector<1x128xf32> to vector<8x128xf32>
    %21 = arith.addf %18, %20 : vector<8x128xf32>
    %22 = tpu.iota {dimensions = array<i32: 1>} : vector<8x128xi32>
    %c2_i32 = arith.constant 2 : i32
    %23 = vector.broadcast %c2_i32 : i32 to vector<8x128xi32>
    %24 = arith.cmpi sge, %22, %23 : vector<8x128xi32>
    %c4_i32 = arith.constant 4 : i32
    %25 = vector.broadcast %c4_i32 : i32 to vector<8x128xi32>
    %26 = arith.cmpi slt, %22, %25 : vector<8x128xi32>
    %27 = arith.andi %24, %26 : vector<8x128xi1>
    %cst_17 = arith.constant 9.99999997E-7 : f32
    %cst_18 = arith.constant 2.000000e+00 : f32
    %28 = vector.broadcast %cst_17 : f32 to vector<8x128xf32>
    %29 = arith.maximumf %28, %21 : vector<8x128xf32>
    %30 = vector.broadcast %cst_18 : f32 to vector<8x128xf32>
    %31 = arith.minimumf %30, %29 : vector<8x128xf32>
    %32 = arith.select %27, %31, %21 : vector<8x128xi1>, vector<8x128xf32>
    %c0_19 = arith.constant 0 : index
    %c0_20 = arith.constant 0 : index
    %33 = vector.load %arg8[%c0_19, %c0_20] : memref<8x128xf32, #tpu.memory_space<vmem>>, vector<8x128xf32>
    tpu.vector_store %arg8[%c0_19, %c0_20], %32 {strides = array<i32>} : memref<8x128xf32, #tpu.memory_space<vmem>>, vector<8x128xf32>,
    return
  }
  func.func @transform_0(%arg0: i32) -> (i32, i32) {
    %c0_i32 = arith.constant 0 : i32
    %c0_i32_0 = arith.constant 0 : i32
    return %arg0, %c0_i32 : i32, i32
  }
  func.func @transform_1(%arg0: i32) -> (i32, i32) {
    %c0_i32 = arith.constant 0 : i32
    %c0_i32_0 = arith.constant 0 : i32
    %c0_i32_1 = arith.constant 0 : i32
    return %c0_i32, %c0_i32_0 : i32, i32
  }
  func.func @transform_2(%arg0: i32) -> (i32, i32) {
    %c0_i32 = arith.constant 0 : i32
    %c0_i32_0 = arith.constant 0 : i32
    %c0_i32_1 = arith.constant 0 : i32
    return %c0_i32, %c0_i32_0 : i32, i32
  }
  func.func @transform_3(%arg0: i32) -> (i32, i32) {
    %c0_i32 = arith.constant 0 : i32
    %c0_i32_0 = arith.constant 0 : i32
    %c0_i32_1 = arith.constant 0 : i32
    return %c0_i32, %c0_i32_0 : i32, i32
  }
  func.func @transform_4(%arg0: i32) -> (i32, i32) {
    %c0_i32 = arith.constant 0 : i32
    %c0_i32_0 = arith.constant 0 : i32
    %c0_i32_1 = arith.constant 0 : i32
    return %c0_i32, %c0_i32_0 : i32, i32
  }
  func.func @transform_5(%arg0: i32) -> (i32, i32) {
    %c0_i32 = arith.constant 0 : i32
    %c0_i32_0 = arith.constant 0 : i32
    %c0_i32_1 = arith.constant 0 : i32
    return %c0_i32, %c0_i32_0 : i32, i32
  }
  func.func @transform_6(%arg0: i32) -> (i32, i32) {
    %c0_i32 = arith.constant 0 : i32
    %c0_i32_0 = arith.constant 0 : i32
    %c0_i32_1 = arith.constant 0 : i32
    return %c0_i32, %c0_i32_0 : i32, i32
  }
  func.func @transform_7(%arg0: i32) -> (i32, i32) {
    %c0_i32 = arith.constant 0 : i32
    %c0_i32_0 = arith.constant 0 : i32
    return %arg0, %c0_i32 : i32, i32
  }
}

</mosaic_0001>

<bundles_post_ra>
// kernel: tpu_custom_call.1
= control target key start
LH: loop header
LB: loop body
LE: loop exit
PB: predicated region body
PF: predicated region fallthrough
CT: control target
= control target key end

     0   :  { %12 = vsyncpa [#allocation3], 0  ;;  %s1052_s0 = inlined_call_operand.hbm [shape: bf16[8,128], index: 0, kind: input, shape index: {}]   ;;  %s1053_s1 = inlined_call_operand.hbm [shape: bf16[128,256], index: 1, kind: input, shape index: {}]   ;;  %s1054_s2 = inlined_call_operand.vmem [shape: f32[1,256], index: 2, kind: input, shape index: {}]   ;;  %s1055_s3 = inlined_call_operand.hbm [shape: bf16[256,256], index: 3, kind: input, shape index: {}]   ;;  %s1056_s4 = inlined_call_operand.vmem [shape: f32[1,256], index: 4, kind: input, shape index: {}]   ;;  %s1057_s5 = inlined_call_operand.hbm [shape: bf16[256,128], index: 5, kind: input, shape index: {}]   ;;  %s1058_s6 = inlined_call_operand.vmem [shape: f32[1,128], index: 6, kind: input, shape index: {}]   ;;  %s1059_s7 = inlined_call_operand.hbm [shape: f32[8,128], index: 7, kind: output, shape index: {}]  }
   0x1   :  { %13 = vsyncpa [#allocation6], 0 }
   0x2   :  { %14 = vsyncpa [#allocation9], 0 }
   0x3   :  { %15 = vsyncpa [#allocation4], 0  ;;  %s978_s24 = smov [#allocation5]  }
   0x4   :  { %s31_s25 = sshll.u32 %s978_s24, 4  ;;  %s32_s25 = int_to_ptr.vmem [resolvable:$true] %s31_s25 }
   0x5   :  { %s878_s26 = scalar_lea.vmem %s32_s25, 2048  ;;  %p883_p1 = scmp.lt.s32.totalorder %s32_s25, %s32_s25 }
   0x6   :  { %p879_p0 = scmp.ne.s32.totalorder %s32_s25, %s878_s26  ;;  %p884_p2 = scmp.lt.s32.totalorder %s878_s26, %s878_s26 }
   0x8   :  { %p885_p3 = por %p884_p2, %p883_p1 }
   0xa   :  { %p886_p4 = pnand %p885_p3, %p879_p0 }
   0xc   :  { %889 = shalt.err (!%p886_p4)
}
   0xd   :  { %s979_s27 = smov 128   ;;  %s980_s28 = smov 8  }
   0xe   :  { %37 = dma.hbm_to_vmem [thread:$0]  %s1053_s1, 2048, %s32_s25, [#allocation6], %s979_s27, %s979_s27, %s980_s28  }
   0xf   :  { %s981_s8 = smov [#allocation2]   ;;  %s982_s10 = smov [#allocation7]  }
  0x10   :  { %s22_s9 = sshll.u32 %s981_s8, 4  ;;  %s45_s11 = sshll.u32 %s982_s10, 4  ;;  %s23_s9 = int_to_ptr.vmem [resolvable:$true] %s22_s9  ;;  %s46_s11 = int_to_ptr.vmem [resolvable:$true] %s45_s11 }
  0x11   :  { %s898_s12 = scalar_lea.vmem %s23_s9, 64  ;;  %p903_p6 = scmp.lt.s32.totalorder %s23_s9, %s23_s9 }
  0x12   :  { %p899_p5 = scmp.ne.s32.totalorder %s23_s9, %s898_s12  ;;  %p904_p7 = scmp.lt.s32.totalorder %s898_s12, %s898_s12 }
  0x14   :  { %p905_p8 = por %p904_p7, %p903_p6 }
  0x16   :  { %p906_p9 = pnand %p905_p8, %p899_p5 }
  0x18   :  { %909 = shalt.err (!%p906_p9)
}
  0x19   :  { %25 = dma.hbm_to_vmem [thread:$0]  %s1052_s0, 64, %s23_s9, [#allocation3]  }
  0x1a   :  { %s918_s15 = scalar_lea.vmem %s46_s11, 4096  ;;  %p923_p11 = scmp.lt.s32.totalorder %s46_s11, %s46_s11 }
  0x1b   :  { %p919_p10 = scmp.ne.s32.totalorder %s46_s11, %s918_s15  ;;  %p924_p12 = scmp.lt.s32.totalorder %s918_s15, %s918_s15 }
  0x1d   :  { %p925_p13 = por %p924_p12, %p923_p11 }
  0x1f   :  { %p926_p0 = pnand %p925_p13, %p919_p10 }
  0x21   :  { %929 = shalt.err (!%p926_p0)
}
  0x22   :  { %51 = dma.hbm_to_vmem [thread:$0]  %s1055_s3, 4096, %s46_s11, [#allocation6], %s979_s27, %s979_s27, %s980_s28  }
  0x23   :  { %s983_s17 = smov [#allocation8]  }
  0x24   :  { %s59_s18 = sshll.u32 %s983_s17, 4  ;;  %s60_s18 = int_to_ptr.vmem [resolvable:$true] %s59_s18 }
  0x25   :  { %s938_s19 = scalar_lea.vmem %s60_s18, 2048  ;;  %p943_p2 = scmp.lt.s32.totalorder %s60_s18, %s60_s18 }
  0x26   :  { %p939_p1 = scmp.ne.s32.totalorder %s60_s18, %s938_s19  ;;  %p944_p3 = scmp.lt.s32.totalorder %s938_s19, %s938_s19 }
  0x28   :  { %p945_p4 = por %p944_p3, %p943_p2 }
  0x2a   :  { %p946_p5 = pnand %p945_p4, %p939_p1 }
  0x2c   :  { %949 = shalt.err (!%p946_p5)
}
  0x2d   :  { %s984_s0 = smov 64   ;;  %s985_s20 = smov 4  }
  0x2e   :  { %65 = dma.hbm_to_vmem [thread:$0]  %s1057_s5, 2048, %s60_s18, [#allocation9], %s984_s0, %s984_s0, %s985_s20  }
  0x2f   :  { %970 = dma.done.wait [#allocation3], 64  }
  0x30   :  { %971 = vsyncadd [#allocation3], 4294967232 }
  0x31   :  { %972 = dma.done.wait [#allocation6], 6144  }
  0x32   :  { %973 = vsyncadd [#allocation6], 4294961152 }
  0x33   :  { %974 = dma.done.wait [#allocation9], 2048  }
  0x34   :  { %975 = vsyncadd [#allocation9], 4294965248  ;;  %v986_v0 = vmov 0   ;;  %v782_v1 = vld [vmem:[#allocation5 + $0x74] ss:$8 sps:$4 sm:$0xff]   ;;  %v858_v54 = vld [vmem:[#allocation8 + $0x68] sm:$0xff]   ;;  %v100_v62 = vlaneseq }
  0x35   :  { %222 = vmatprep.mubr.bf16.mxu0 %v986_v0  ;;  %v784_v2 = vld [vmem:[#allocation5 + $0x70] ss:$8 sps:$4 sm:$0xff]   ;;  %190 = vmatprep.subr.bf16.mxu0 %v782_v1  ;;  %v785_v3 = vld [vmem:[#allocation5 + $0x64] ss:$8 sps:$4 sm:$0xff]   ;;  %v787_v4 = vld [vmem:[#allocation5 + $0x60] ss:$8 sps:$4 sm:$0xff]  }
  0x36   :  { %191 = vmatpush1.bf16.msra.mxu0 %v784_v2  ;;  %v788_v5 = vld [vmem:[#allocation5 + $0x54] ss:$8 sps:$4 sm:$0xff]   ;;  %v790_v6 = vld [vmem:[#allocation5 + $0x50] ss:$8 sps:$4 sm:$0xff]   ;;  %v791_v7 = vld [vmem:[#allocation5 + $0x44] ss:$8 sps:$4 sm:$0xff]  }
  0x37   :  { %192 = vmatprep.subr.bf16.mxu0 %v785_v3  ;;  %v793_v8 = vld [vmem:[#allocation5 + $0x40] ss:$8 sps:$4 sm:$0xff]   ;;  %v794_v9 = vld [vmem:[#allocation5 + $0x34] ss:$8 sps:$4 sm:$0xff]   ;;  %v808_v11 = vld [vmem:[#allocation7 + $0x70] ss:$8 sps:$4 sm:$0xff]  }
  0x38   :  { %v806_v10 = vld [vmem:[#allocation7 + $0x74] ss:$8 sps:$4 sm:$0xff]   ;;  %v809_v12 = vld [vmem:[#allocation7 + $0x64] ss:$8 sps:$4 sm:$0xff]   ;;  %v796_v13 = vld [vmem:[#allocation5 + $0x30] ss:$8 sps:$4 sm:$0xff]  }
  0x39   :  { %439 = vmatprep.subr.bf16.mxu1 %v806_v10  ;;  %v811_v14 = vld [vmem:[#allocation7 + $0x60] ss:$8 sps:$4 sm:$0xff]   ;;  %v812_v15 = vld [vmem:[#allocation7 + $0x54] ss:$8 sps:$4 sm:$0xff]   ;;  %v797_v16 = vld [vmem:[#allocation5 + $0x24] ss:$8 sps:$4 sm:$0xff]  }
  0x3a   :  { %193 = vmatpush1.bf16.msra.mxu0 %v787_v4  ;;  %440 = vmatpush1.bf16.msra.mxu1 %v808_v11  ;;  %v799_v17 = vld [vmem:[#allocation5 + $0x20] ss:$8 sps:$4 sm:$0xff]   ;;  %v814_v18 = vld [vmem:[#allocation7 + $0x50] ss:$8 sps:$4 sm:$0xff]   ;;  %v815_v19 = vld [vmem:[#allocation7 + $0x44] ss:$8 sps:$4 sm:$0xff]  }
  0x3b   :  { %194 = vmatprep.subr.bf16.mxu0 %v788_v5  ;;  %441 = vmatprep.subr.bf16.mxu1 %v809_v12  ;;  %v800_v20 = vld [vmem:[#allocation5 + $0x14] ss:$8 sps:$4 sm:$0xff]   ;;  %v802_v21 = vld [vmem:[#allocation5 + $0x10] ss:$8 sps:$4 sm:$0xff]   ;;  %v817_v22 = vld [vmem:[#allocation7 + $0x40] ss:$8 sps:$4 sm:$0xff]  }
  0x3c   :  { %v818_v23 = vld [vmem:[#allocation7 + $0x34] ss:$8 sps:$4 sm:$0xff]   ;;  %v803_v24 = vld [vmem:[#allocation5 + $0x4] ss:$8 sps:$4 sm:$0xff]   ;;  %v805_v25 = vld [vmem:[#allocation5] ss:$8 sps:$4 sm:$0xff]  }
  0x3d   :  { %v820_v26 = vld [vmem:[#allocation7 + $0x30] ss:$8 sps:$4 sm:$0xff]   ;;  %v821_v27 = vld [vmem:[#allocation7 + $0x24] ss:$8 sps:$4 sm:$0xff]   ;;  %v81_v28 = vld [vmem:[#allocation2] sm:$0xf] }
  0x3e   :  { %195 = vmatpush1.bf16.msra.mxu0 %v790_v6  ;;  %442 = vmatpush1.bf16.msra.mxu1 %v811_v14  ;;  %v823_v29 = vld [vmem:[#allocation7 + $0x20] ss:$8 sps:$4 sm:$0xff]   ;;  %v824_v30 = vld [vmem:[#allocation7 + $0x14] ss:$8 sps:$4 sm:$0xff]   ;;  %v826_v31 = vld [vmem:[#allocation7 + $0x10] ss:$8 sps:$4 sm:$0xff]  }
  0x3f   :  { %196 = vmatprep.subr.bf16.mxu0 %v791_v7  ;;  %443 = vmatprep.subr.bf16.mxu1 %v812_v15  ;;  %v827_v32 = vld [vmem:[#allocation7 + $0x4] ss:$8 sps:$4 sm:$0xff]   ;;  %v829_v33 = vld [vmem:[#allocation7] ss:$8 sps:$4 sm:$0xff]   ;;  %v830_v34 = vld [vmem:[#allocation7 + $0xf4] ss:$8 sps:$4 sm:$0xff]  }
  0x40   :  { %v832_v35 = vld [vmem:[#allocation7 + $0xf0] ss:$8 sps:$4 sm:$0xff]   ;;  %v833_v36 = vld [vmem:[#allocation7 + $0xe4] ss:$8 sps:$4 sm:$0xff]   ;;  %v835_v37 = vld [vmem:[#allocation7 + $0xe0] ss:$8 sps:$4 sm:$0xff]  }
  0x41   :  { %v836_v38 = vld [vmem:[#allocation7 + $0xd4] ss:$8 sps:$4 sm:$0xff]   ;;  %v838_v39 = vld [vmem:[#allocation7 + $0xd0] ss:$8 sps:$4 sm:$0xff]   ;;  %v839_v40 = vld [vmem:[#allocation7 + $0xc4] ss:$8 sps:$4 sm:$0xff]  }
  0x42   :  { %197 = vmatpush1.bf16.msra.mxu0 %v793_v8  ;;  %444 = vmatpush1.bf16.msra.mxu1 %v814_v18  ;;  %v841_v41 = vld [vmem:[#allocation7 + $0xc0] ss:$8 sps:$4 sm:$0xff]   ;;  %v842_v42 = vld [vmem:[#allocation7 + $0xb4] ss:$8 sps:$4 sm:$0xff]   ;;  %v844_v43 = vld [vmem:[#allocation7 + $0xb0] ss:$8 sps:$4 sm:$0xff]  }
  0x43   :  { %198 = vmatprep.subr.bf16.mxu0 %v794_v9  ;;  %445 = vmatprep.subr.bf16.mxu1 %v815_v19  ;;  %v845_v44 = vld [vmem:[#allocation7 + $0xa4] ss:$8 sps:$4 sm:$0xff]   ;;  %v847_v45 = vld [vmem:[#allocation7 + $0xa0] ss:$8 sps:$4 sm:$0xff]   ;;  %v848_v46 = vld [vmem:[#allocation7 + $0x94] ss:$8 sps:$4 sm:$0xff]  }
  0x44   :  { %v850_v47 = vld [vmem:[#allocation7 + $0x90] ss:$8 sps:$4 sm:$0xff]   ;;  %v851_v48 = vld [vmem:[#allocation7 + $0x84] ss:$8 sps:$4 sm:$0xff]   ;;  %v853_v49 = vld [vmem:[#allocation7 + $0x80] ss:$8 sps:$4 sm:$0xff]  }
  0x45   :  { %v854_v50 = vld [vmem:[#allocation8 + $0x78] sm:$0xff]   ;;  %v856_v52 = vld [vmem:[#allocation8 + $0x70] sm:$0xff]   ;;  %v859_v55 = vld [vmem:[#allocation8 + $0x28] sm:$0xff]   ;;  %v101_v63 = vshrl.u32 %v100_v62, 7 }
  0x46   :  { %199 = vmatpush1.bf16.msra.mxu0 %v796_v13  ;;  %446 = vmatpush1.bf16.msra.mxu1 %v817_v22  ;;  %v855_v51 = vld [vmem:[#allocation8 + $0x38] sm:$0xff]   ;;  %v857_v53 = vld [vmem:[#allocation8 + $0x30] sm:$0xff]   ;;  %v860_v56 = vld [vmem:[#allocation8 + $0x60] sm:$0xff]  }
  0x47   :  { %200 = vmatprep.subr.bf16.mxu0 %v797_v16  ;;  %447 = vmatprep.subr.bf16.mxu1 %v818_v23  ;;  %v861_v57 = vld [vmem:[#allocation8 + $0x20] sm:$0xff]   ;;  %v862_v58 = vld [vmem:[#allocation8 + $0x58] sm:$0xff]   ;;  %v864_v60 = vld [vmem:[#allocation8 + $0x50] sm:$0xff]   ;;  %v102_v0 = vsub.s32 0, %v101_v63  ;;  %v106_v2 = vsub.s32 1, %v101_v63 }
  0x48   :  { %v863_v59 = vld [vmem:[#allocation8 + $0x18] sm:$0xff]   ;;  %v865_v61 = vld [vmem:[#allocation8 + $0x10] sm:$0xff]   ;;  %v866_v15 = vld [vmem:[#allocation8 + $0x48] sm:$0xff]  }
  0x49   :  { %v98_v1 = vld [vmem:[%s1054_s2] sm:$0x3]  ;;  %v867_v16 = vld [vmem:[#allocation8 + $0x8] sm:$0xff]   ;;  %v869_v18 = vld [vmem:[#allocation8] sm:$0xff]  }
  0x4a   :  { %201 = vmatpush1.bf16.msra.mxu0 %v799_v17  ;;  %448 = vmatpush1.bf16.msra.mxu1 %v820_v26  ;;  %v103_v3 = vrot.slane %v98_v1, %v102_v0  ;;  %v107_v4 = vrot.slane %v98_v1, %v106_v2  ;;  %v868_v17 = vld [vmem:[#allocation8 + $0x40] sm:$0xff]   ;;  %v267_v19 = vld [vmem:[%s1056_s4] sm:$0x3]  ;;  %s987_s4 = smov [#allocation10]  }
  0x4b   :  { %202 = vmatprep.subr.bf16.mxu0 %v800_v20  ;;  %449 = vmatprep.subr.bf16.mxu1 %v821_v27  ;;  %v272_v20 = vrot.slane %v267_v19, %v102_v0  ;;  %s674_s26 = sshll.u32 %s987_s4, 4  ;;  %s675_s26 = int_to_ptr.vmem [resolvable:$true] %s674_s26 }
  0x4c   :  { %s950_s27 = scalar_lea.vmem %s675_s26, 128  ;;  %p955_p7 = scmp.lt.s32.totalorder %s675_s26, %s675_s26 }
  0x4d   :  { %p951_p6 = scmp.ne.s32.totalorder %s675_s26, %s950_s27  ;;  %p956_p8 = scmp.lt.s32.totalorder %s950_s27, %s950_s27 }
  0x4e   :  { %203 = vmatpush1.bf16.msra.mxu0 %v802_v21  ;;  %450 = vmatpush1.bf16.msra.mxu1 %v823_v29  ;;  %v276_v21 = vrot.slane %v267_v19, %v106_v2 }
  0x4f   :  { %204 = vmatprep.subr.bf16.mxu0 %v803_v24  ;;  %451 = vmatprep.subr.bf16.mxu1 %v824_v30  ;;  %p957_p9 = por %p956_p8, %p955_p7 }
  0x51   :  { %p958_p10 = pnand %p957_p9, %p951_p6 }
  0x52   :  { %205 = vmatpush1.bf16.msra.mxu0 %v805_v25  ;;  %452 = vmatpush1.bf16.msra.mxu1 %v826_v31 }
  0x53   :  { %453 = vmatprep.subr.bf16.mxu1 %v827_v32  ;;  %750 = vmatprep.subr.bf16.mxu0 %v854_v50 }
  0x55   :  { %223 = vmatmul.mubr.bf16.vlgmr.msra.gmra.mxu0 %v81_v28 }
  0x56   :  { %454 = vmatpush1.bf16.msra.mxu1 %v829_v33  ;;  %751 = vmatpush3.bf16.msra.mxu0 %v855_v51  ;;  %v660_v33 = vand.u32 127, %v100_v62 }
  0x57   :  { %455 = vmatprep.subr.bf16.mxu1 %v830_v34  ;;  %752 = vmatprep.subr.bf16.mxu0 %v856_v52  ;;  %v733_v34 = vld [vmem:[%s1058_s6] ss:$0 sm:$0xff] }
  0x58   :  { %vm661_vm0 = vcmp.ge.s32.totalorder %v660_v33, 2  ;;  %vm662_vm1 = vcmp.lt.s32.totalorder %v660_v33, 4 }
  0x59   :  { %vm663_vm2 = vmand %vm661_vm0, %vm662_vm1 }
  0x5a   :  { %456 = vmatpush2.bf16.msra.mxu1 %v832_v35  ;;  %753 = vmatpush3.bf16.msra.mxu0 %v857_v53 }
  0x5b   :  { %457 = vmatprep.subr.bf16.mxu1 %v833_v36  ;;  %754 = vmatprep.subr.bf16.mxu0 %v858_v54 }
  0x5e   :  { %458 = vmatpush2.bf16.msra.mxu1 %v835_v37  ;;  %755 = vmatpush3.bf16.msra.mxu0 %v859_v55 }
  0x5f   :  { %459 = vmatprep.subr.bf16.mxu1 %v836_v38  ;;  %756 = vmatprep.subr.bf16.mxu0 %v860_v56 }
  0x62   :  { %460 = vmatpush2.bf16.msra.mxu1 %v838_v39  ;;  %757 = vmatpush3.bf16.msra.mxu0 %v861_v57 }
  0x63   :  { %461 = vmatprep.subr.bf16.mxu1 %v839_v40  ;;  %758 = vmatprep.subr.bf16.mxu0 %v862_v58 }
  0x66   :  { %462 = vmatpush2.bf16.msra.mxu1 %v841_v41  ;;  %759 = vmatpush3.bf16.msra.mxu0 %v863_v59 }
  0x67   :  { %463 = vmatprep.subr.bf16.mxu1 %v842_v42  ;;  %760 = vmatprep.subr.bf16.mxu0 %v864_v60 }
  0x6a   :  { %464 = vmatpush2.bf16.msra.mxu1 %v844_v43  ;;  %761 = vmatpush3.bf16.msra.mxu0 %v865_v61 }
  0x6b   :  { %465 = vmatprep.subr.bf16.mxu1 %v845_v44  ;;  %762 = vmatprep.subr.bf16.mxu0 %v866_v15 }
  0x6e   :  { %466 = vmatpush2.bf16.msra.mxu1 %v847_v45  ;;  %763 = vmatpush3.bf16.msra.mxu0 %v867_v16 }
  0x6f   :  { %467 = vmatprep.subr.bf16.mxu1 %v848_v46  ;;  %764 = vmatprep.subr.bf16.mxu0 %v868_v17 }
  0x72   :  { %468 = vmatpush2.bf16.msra.mxu1 %v850_v47  ;;  %765 = vmatpush3.bf16.msra.mxu0 %v869_v18 }
  0x73   :  { %469 = vmatprep.subr.bf16.mxu1 %v851_v48 }
  0x76   :  { %470 = vmatpush2.bf16.msra.mxu1 %v853_v49 }
 0x115   :  { %v224_v5 = vpop.f32.mrf.mxu0 }
 0x116   :  { %v225_v6 = vadd.f32 %v224_v5, %v103_v3 }
 0x117   :  { %v226_v7 = vpop.f32.mrf.mxu0 }
 0x118   :  { %v227_v8 = vadd.f32 %v226_v7, %v107_v4  ;;  %v231_v9 = vmax.f32 %v225_v6, 0.0 }
 0x119   :  { %v228_v10 = vpop.f32.mrf.mxu0 }
 0x11a   :  { %v232_v11 = vmax.f32 %v227_v8, 0.0  ;;  %v233_v14 = vpack.c.bf16 %v231_v9, %v231_v9 }
 0x11b   :  { %v229_v12 = vpop.f32.mrf.mxu0 }
 0x11c   :  { %v234_v13 = vpack.c.bf16 %v232_v11, %v232_v11 }
 0x11e   :  { %471 = vmatprep.mubr.bf16.mxu1 %v234_v13 }
 0x11f   :  { %472 = vmatmul.mubr.bf16.vlgmr.msra.gmra.mxu1 %v233_v14 }
 0x1df   :  { %v473_v22 = vpop.f32.mrf.mxu1 }
 0x1e0   :  { %v474_v23 = vadd.f32 %v473_v22, %v272_v20 }
 0x1e1   :  { %v475_v24 = vpop.f32.mrf.mxu1 }
 0x1e2   :  { %v476_v25 = vadd.f32 %v475_v24, %v276_v21  ;;  %v480_v26 = vmax.f32 %v474_v23, 0.0 }
 0x1e3   :  { %v477_v27 = vpop.f32.mrf.mxu1 }
 0x1e4   :  { %v481_v28 = vmax.f32 %v476_v25, 0.0  ;;  %v482_v31 = vpack.c.bf16 %v480_v26, %v480_v26 }
 0x1e5   :  { %v478_v29 = vpop.f32.mrf.mxu1 }
 0x1e6   :  { %v483_v30 = vpack.c.bf16 %v481_v28, %v481_v28 }
 0x1e8   :  { %651 = vmatprep.mubr.bf16.mxu0 %v483_v30 }
 0x1e9   :  { %652 = vmatmul.mubr.bf16.vlgmr.msra.gmra.mxu0 %v482_v31 }
 0x2a9   :  { %v766_v32 = vpop.f32.mrf.mxu0 }
 0x2ab   :  { %v767_v35 = vpop.f32.mrf.mxu0 }
 0x2ac   :  { %v768_v36 = vadd.f32 %v767_v35, %v766_v32 }
 0x2ad   :  { %v769_v37 = vpop.f32.mrf.mxu0 }
 0x2ae   :  { %v654_v38 = vadd.f32 %v768_v36, %v733_v34 }
 0x2af   :  { %v770_v39 = vpop.f32.mrf.mxu0 }
 0x2b0   :  { %v664_v40 = vmax.f32 %v654_v38, 1e-06 }
 0x2b2   :  { %v665_v41 = vmin.f32 %v664_v40, 2.0 }
 0x2b4   :  { %v666_v42 = vsel %vm663_vm2, %v665_v41, %v654_v38 }
 0x2b5   :  { %667 = vst [vmem:[#allocation10] sm:$0xff] %v666_v42 }
 0x2b6   :  { %961 = shalt.err (!%p958_p10)
}
 0x2b7   :  { %677 = dma.vmem_to_hbm [thread:$0]  %s675_s26, 128, %s1059_s7, [#allocation4]  }
 0x2b8   :  { %976 = dma.done.wait [#allocation4], 128  }
 0x2b9   :  { %977 = vsyncadd [#allocation4], 4294967168 }
 0x2ba   :  { %681 = vsyncpa [#allocation3], 1 }
 0x2bb   :  { %682 = vsyncpa [#allocation6], 1 }
 0x2bc   :  { %683 = vsyncpa [#allocation9], 1 }
 0x2bd   :  { %684 = vsyncpa [#allocation4], 1 }

</bundles_post_ra>
